<compile_context>
chip_gen: v7x
topology: tpu7x:2x2x1
jax: 0.10.0
libtpu: 0.0.40
codegen_flags: <defaults>
</compile_context>

<pallas_src>
import jax
import jax.numpy as jnp
from jax.experimental import pallas as pl
from jax.experimental.pallas import tpu as pltpu


def dnn_kernel(x_ref, w1_ref, b1_ref, w3_ref, b3_ref, out_ref):
    # dense1 (BN1 + weight_norm Linear folded) + ReLU  -> MXU matmul
    h = jnp.dot(x_ref[...], w1_ref[...],
                preferred_element_type=jnp.float32) + b1_ref[...]
    h = jnp.maximum(h, 0.0)

    # dense3 (BN2 + weight_norm Linear folded, out_features=1):
    # N=1 matvec done as VPU multiply + lane reduction instead of an MXU op.
    logit = jnp.sum(h * w3_ref[...], axis=-1, keepdims=True) + b3_ref[0]

    out_ref[...] = jax.nn.sigmoid(logit)


def make_params(key, in_chanel, hidden):
    """Deterministic parameter init (shapes match the PyTorch module)."""
    ks = jax.random.split(key, 10)
    p = {}
    # BatchNorm1d(in_chanel): gamma, beta, running_mean, running_var
    p["bn1_gamma"] = jax.random.uniform(ks[0], (in_chanel,), jnp.float32, 0.5, 1.5)
    p["bn1_beta"] = jax.random.normal(ks[1], (in_chanel,), jnp.float32) * 0.1
    p["bn1_mean"] = jax.random.normal(ks[2], (in_chanel,), jnp.float32) * 0.1
    p["bn1_var"] = jax.random.uniform(ks[3], (in_chanel,), jnp.float32, 0.5, 1.5)
    # weight_norm(Linear(in_chanel, hidden)): v (H, C), g (H,), bias (H,)
    p["v1"] = jax.random.normal(ks[4], (hidden, in_chanel), jnp.float32) * 0.1
    p["g1"] = jax.random.uniform(ks[5], (hidden,), jnp.float32, 0.5, 1.5)
    p["b1"] = jax.random.normal(ks[6], (hidden,), jnp.float32) * 0.1
    # BatchNorm1d(hidden)
    p["bn3_gamma"] = jax.random.uniform(ks[7], (hidden,), jnp.float32, 0.5, 1.5)
    p["bn3_beta"] = jax.random.normal(ks[8], (hidden,), jnp.float32) * 0.1
    p["bn3_mean"] = jnp.zeros((hidden,), jnp.float32)
    p["bn3_var"] = jnp.ones((hidden,), jnp.float32)
    # weight_norm(Linear(hidden, 1)): v (1, H), g (1,), bias (1,)
    k9a, k9b, k9c = jax.random.split(ks[9], 3)
    p["v3"] = jax.random.normal(k9a, (1, hidden), jnp.float32) * 0.1
    p["g3"] = jax.random.uniform(k9b, (1,), jnp.float32, 0.5, 1.5)
    p["b3"] = jax.random.normal(k9c, (1,), jnp.float32) * 0.1
    return p


def _fold_bn(gamma, beta, mean, var, eps=1e-5):
    scale = gamma * jax.lax.rsqrt(var + eps)
    bias = beta - mean * scale
    return scale, bias


def _weight_norm(v, g):
    # torch weight_norm(dim=0): w[o, :] = g[o] * v[o, :] / ||v[o, :]||
    norm = jnp.sqrt(jnp.sum(v * v, axis=1, keepdims=True))
    norm = jnp.maximum(norm, 1e-12)   # guard against zero-norm rows
    return (g[:, None] / norm) * v


def _round_up(x, m):
    return ((x + m - 1) // m) * m


def dnn_forward(x, params, tile_b=256):
    B, C = x.shape
    H = params["b1"].shape[0]

    # --- fold BN1/BN3 + weight_norm into plain (w, b) in the wrapper ---------
    bn1_s, bn1_b = _fold_bn(params["bn1_gamma"], params["bn1_beta"],
                            params["bn1_mean"], params["bn1_var"])
    bn3_s, bn3_b = _fold_bn(params["bn3_gamma"], params["bn3_beta"],
                            params["bn3_mean"], params["bn3_var"])
    w1_t = _weight_norm(params["v1"], params["g1"]).T          # (C, H)
    w3_row = _weight_norm(params["v3"], params["g3"])          # (1, H)

    # relu((x*s1 + c1) @ w1 + b1) == relu(x @ (s1[:,None]*w1) + (c1 @ w1 + b1))
    w1f = bn1_s[:, None] * w1_t                                # (C, H)
    b1f = (bn1_b @ w1_t + params["b1"]).reshape(1, H)          # (1, H)
    # (h*s3 + c3) @ w3.T + b3 == h @ (w3*s3).T + (w3 @ c3 + b3)
    w3f = (w3_row * bn3_s).reshape(1, H)                       # (1, H)
    b3f = (w3_row @ bn3_b + params["b3"]).reshape(1,)          # (1,) scalar

    # --- batch tiling ---------------------------------------------------------
    tile_b = _round_up(max(8, min(tile_b, _round_up(B, 8))), 8)
    b_pad = _round_up(B, tile_b)
    if b_pad != B:
        x = jnp.pad(x, ((0, b_pad - B), (0, 0)))
    grid = (b_pad // tile_b,)

    out = pl.pallas_call(
        dnn_kernel,
        out_shape=jax.ShapeDtypeStruct((b_pad, 1), jnp.float32),
        grid=grid,
        in_specs=[
            pl.BlockSpec((tile_b, C), lambda i: (i, 0)),          # x tile
            pl.BlockSpec((C, H), lambda i: (0, 0)),               # w1' (resident)
            pl.BlockSpec((1, H), lambda i: (0, 0)),               # b1' (resident)
            pl.BlockSpec((1, H), lambda i: (0, 0)),               # w3' (resident)
            pl.BlockSpec(memory_space=pltpu.MemorySpace.SMEM),    # b3' scalar
        ],
        out_specs=pl.BlockSpec((tile_b, 1), lambda i: (i, 0)),
        compiler_params=pltpu.CompilerParams(
            dimension_semantics=("parallel",)),
    )(x, w1f, b1f, w3f, b3f)

    return out[:B]


def dnn_reference(x, params):
    """Pure-JAX reference of the eval-mode PyTorch forward (unfused path)."""
    bn1_s, bn1_b = _fold_bn(params["bn1_gamma"], params["bn1_beta"],
                            params["bn1_mean"], params["bn1_var"])
    bn3_s, bn3_b = _fold_bn(params["bn3_gamma"], params["bn3_beta"],
                            params["bn3_mean"], params["bn3_var"])
    w1 = _weight_norm(params["v1"], params["g1"])
    w3 = _weight_norm(params["v3"], params["g3"])
    h = x * bn1_s + bn1_b
    h = jnp.maximum(h @ w1.T + params["b1"], 0.0)
    h = h * bn3_s + bn3_b
    return jax.nn.sigmoid(h @ w3.T + params["b3"])


if __name__ == "__main__":
    B, C, H = 20, 32, 64   # batch, in_chanel, hidden_layer_size
    key = jax.random.PRNGKey(0)
    kx, kp = jax.random.split(key)
    x = jax.random.normal(kx, (B, C), jnp.float32)
    params = make_params(kp, C, H)

    # tile_b=8 -> grid=(3,) with padding, exercising the tiled/pipelined path.
    out = dnn_forward(x, params, tile_b=8)
    jax.block_until_ready(out)

    ref = dnn_reference(x, params)
    assert out.shape == (B, 1)
    assert jnp.allclose(out, ref, atol=1e-5, rtol=1e-5), (out, ref)
    print("KERNEL_OK")
</pallas_src>

<mosaic_0001>
module attributes {stable_mosaic.version = 11 : i64} {
  func.func @dnn_kernel(%arg0: i32, %arg1: memref<8x32xf32, #tpu.memory_space<vmem>>, %arg2: memref<32x64xf32, #tpu.memory_space<vmem>>, %arg3: memref<1x64xf32, #tpu.memory_space<vmem>>, %arg4: memref<1x64xf32, #tpu.memory_space<vmem>>, %arg5: memref<1xf32, #tpu.memory_space<smem>>, %arg6: memref<8x1xf32, #tpu.memory_space<vmem>>) attributes {dimension_semantics = [#tpu.dimension_semantics<parallel>], iteration_bounds = array<i64: 3>, scalar_prefetch = 0 : i64, scratch_operands = 0 : i64, tpu.core_type = #tpu.core_type<tc>, window_params = [{transform_indices = @transform_0, window_bounds = array<i64: 8, 32>}, {pipeline_mode = #tpu.pipeline_mode<synchronous>, transform_indices = @transform_1, window_bounds = array<i64: 32, 64>}, {pipeline_mode = #tpu.pipeline_mode<synchronous>, transform_indices = @transform_2, window_bounds = array<i64: 1, 64>}, {pipeline_mode = #tpu.pipeline_mode<synchronous>, transform_indices = @transform_3, window_bounds = array<i64: 1, 64>}, {transform_indices = @transform_4, window_bounds = array<i64: 1>}, {transform_indices = @transform_5, window_bounds = array<i64: 8, 1>}]} {
    %c0 = arith.constant 0 : index
    %c0_0 = arith.constant 0 : index
    %0 = vector.load %arg1[%c0, %c0_0] : memref<8x32xf32, #tpu.memory_space<vmem>>, vector<8x32xf32>
    %c0_1 = arith.constant 0 : index
    %c0_2 = arith.constant 0 : index
    %1 = vector.load %arg2[%c0_1, %c0_2] : memref<32x64xf32, #tpu.memory_space<vmem>>, vector<32x64xf32>
    %cst = arith.constant dense<0.000000e+00> : vector<8x64xf32>
    %2 = tpu.matmul %0, %1, %cst {dimension_numbers = #tpu.dot_dimension_numbers<[1], [0], [0], [1], [0, 0, 1, 1], [], []>} : vector<8x32xf32>, vector<32x64xf32>, vector<8x64xf32> -> vector<8x64xf32>
    %c0_3 = arith.constant 0 : index
    %c0_4 = arith.constant 0 : index
    %3 = vector.load %arg3[%c0_3, %c0_4] : memref<1x64xf32, #tpu.memory_space<vmem>>, vector<1x64xf32>
    %4 = vector.broadcast %3 : vector<1x64xf32> to vector<8x64xf32>
    %5 = arith.addf %2, %4 : vector<8x64xf32>
    %cst_5 = arith.constant 0.000000e+00 : f32
    %6 = vector.broadcast %cst_5 : f32 to vector<8x64xf32>
    %7 = arith.maximumf %5, %6 : vector<8x64xf32>
    %c0_6 = arith.constant 0 : index
    %c0_7 = arith.constant 0 : index
    %8 = vector.load %arg4[%c0_6, %c0_7] : memref<1x64xf32, #tpu.memory_space<vmem>>, vector<1x64xf32>
    %9 = vector.broadcast %8 : vector<1x64xf32> to vector<8x64xf32>
    %10 = arith.mulf %7, %9 : vector<8x64xf32>
    %cst_8 = arith.constant dense<0.000000e+00> : vector<8xf32>
    %11 = vector.multi_reduction <add>, %10, %cst_8 [1] : vector<8x64xf32> to vector<8xf32>
    %12 = vector.shape_cast %11 : vector<8xf32> to vector<8x1xf32>
    %c0_9 = arith.constant 0 : index
    %13 = memref.load %arg5[%c0_9] : memref<1xf32, #tpu.memory_space<smem>>
    %14 = vector.broadcast %13 : f32 to vector<8x1xf32>
    %15 = arith.addf %12, %14 : vector<8x1xf32>
    %16 = arith.negf %15 : vector<8x1xf32>
    %17 = math.exp %16 : vector<8x1xf32>
    %cst_10 = arith.constant 1.000000e+00 : f32
    %18 = vector.broadcast %cst_10 : f32 to vector<8x1xf32>
    %19 = arith.addf %18, %17 : vector<8x1xf32>
    %20 = arith.divf %18, %19 : vector<8x1xf32>
    %c0_11 = arith.constant 0 : index
    %c0_12 = arith.constant 0 : index
    %21 = vector.load %arg6[%c0_11, %c0_12] : memref<8x1xf32, #tpu.memory_space<vmem>>, vector<8x1xf32>
    tpu.vector_store %arg6[%c0_11, %c0_12], %20 {strides = array<i32>} : memref<8x1xf32, #tpu.memory_space<vmem>>, vector<8x1xf32>,
    return
  }
  func.func @transform_0(%arg0: i32) -> (i32, i32) {
    %c0_i32 = arith.constant 0 : i32
    %c0_i32_0 = arith.constant 0 : i32
    return %arg0, %c0_i32 : i32, i32
  }
  func.func @transform_1(%arg0: i32) -> (i32, i32) {
    %c0_i32 = arith.constant 0 : i32
    %c0_i32_0 = arith.constant 0 : i32
    %c0_i32_1 = arith.constant 0 : i32
    return %c0_i32, %c0_i32_0 : i32, i32
  }
  func.func @transform_2(%arg0: i32) -> (i32, i32) {
    %c0_i32 = arith.constant 0 : i32
    %c0_i32_0 = arith.constant 0 : i32
    %c0_i32_1 = arith.constant 0 : i32
    return %c0_i32, %c0_i32_0 : i32, i32
  }
  func.func @transform_3(%arg0: i32) -> (i32, i32) {
    %c0_i32 = arith.constant 0 : i32
    %c0_i32_0 = arith.constant 0 : i32
    %c0_i32_1 = arith.constant 0 : i32
    return %c0_i32, %c0_i32_0 : i32, i32
  }
  func.func @transform_4(%arg0: i32) -> i32 {
    %c0_i32 = arith.constant 0 : i32
    %c0_i32_0 = arith.constant 0 : i32
    return %c0_i32 : i32
  }
  func.func @transform_5(%arg0: i32) -> (i32, i32) {
    %c0_i32 = arith.constant 0 : i32
    %c0_i32_0 = arith.constant 0 : i32
    return %arg0, %c0_i32 : i32, i32
  }
}

</mosaic_0001>

<bundles_post_ra>
// kernel: tpu_custom_call.1
= control target key start
LH: loop header
LB: loop body
LE: loop exit
PB: predicated region body
PF: predicated region fallthrough
CT: control target
= control target key end

     0   :  { %s821_s0 = inlined_call_operand.hbm [shape: f32[24,32], index: 0, kind: input, shape index: {}]   ;;  %s822_s1 = inlined_call_operand.hbm [shape: f32[32,64], index: 1, kind: input, shape index: {}]   ;;  %s823_s2 = inlined_call_operand.vmem [shape: f32[1,64], index: 2, kind: input, shape index: {}]   ;;  %s824_s3 = inlined_call_operand.vmem [shape: f32[1,64], index: 3, kind: input, shape index: {}]   ;;  %s825_s4 = inlined_call_operand.<no memory space> [shape: f32[1], index: 4, kind: input, shape index: {}]   ;;  %s826_s5 = inlined_call_operand.vmem [shape: f32[24,1], index: 5, kind: output, shape index: {}]  }
   0x1   :  { %10 = sst [smem:[#allocation2]] %s825_s4 }
   0x2   :  { %11 = vsyncpa [#allocation4], 0 }
   0x3   :  { %13 = vsyncpa [#allocation4 + $0x1], 0 }
   0x4   :  { %14 = vsyncpa [#allocation6], 0  ;;  %s676_s20 = smov 0   ;;  %s678_s21 = smov 0  }
   0x5   :  { %s680_s22 = smov 0   ;;  %s682_s23 = smov 0  }
   0x6 LB: > { %s695_s4 = sadd.s32 4294967295, %s634_s23   ;;  %p40_p0 = scmp.ne.s32.totalorder %s626_s21, %s622_s20  ;;  %s634_s23 = sphi %s682_s23, %s841_s23   ;;  %s630_s22 = sphi %s680_s22, %s840_s22   ;;  %s626_s21 = sphi %s678_s21, %s839_s21   ;;  %s622_s20 = sphi %s676_s20, %s838_s20  }
   0x7   : > { %p827_p1 = scmp.eq.s32.totalorder %s695_s4, 0  ;;  %p442_p2 = scmp.ge.s32.totalorder %s634_s23, 1 }
   0x8   : > { %p161_p3 = scmp.lt.s32.totalorder %s634_s23, 4  ;;  %s636_s26 = smov [#allocation5]  }
   0x9   : > { %p703_p4 = por %p827_p1, %p40_p0  ;;  %s173_s27 = sshll.u32 %s636_s26, 4  ;;  %s174_s27 = int_to_ptr.vmem [resolvable:$true] %s173_s27 }
   0xa   : > { %p707_p5 = pnand %p442_p2, %p161_p3  ;;  %s720_s29 = sadd.s32 1, %s634_s23  }
   0xb   : > { %s830_s24 = scalar_select %p703_p4, 1, 0 }
   0xc   : > { %s831_s25 = scalar_select %p707_p5, 1, 0 }
   0xd   : > { %p485_p6 = pneg %p707_p5  ;;  %s27_s30 = sadd.s32 1, %s630_s22 }
   0xe   : > { %s24_s6 = ssub.s32 %s634_s23, %s720_s29  ;;  %s538_s9 = scalar_lea.hbm %s822_s1, 512 }
   0xf   : > { %p715_p7 = pnand %p485_p6, %p827_p1  ;;  %p539_p8 = scmp.ne.s32.totalorder %s822_s1, %s538_s9 }
  0x10   : > { %p545_p12 = scmp.lt.u32.totalorder %s538_s9, %s822_s1 }
  0x11   : > { %p540_p9 = pneg %p715_p7 }
  0x13   : > { %p541_p10 = pnand %p540_p9, %p539_p8 }
  0x15   : > { %p542_p11 = pneg %p541_p10 }
  0x17   : > { %p547_p13 = pnand %p545_p12, %p542_p11 }
  0x19   : > { %550 = shalt.err (!%p547_p13)
}
  0x1a   : > { %s551_s14 = scalar_lea.vmem %s174_s27, 512  ;;  %p559_p6 = scmp.lt.s32.totalorder %s174_s27, %s174_s27 }
  0x1b   : > { %p552_p0 = scmp.ne.s32.totalorder %s174_s27, %s551_s14  ;;  %p560_p1 = scmp.lt.s32.totalorder %s551_s14, %s551_s14 }
  0x1d   : > { %p554_p2 = pnand %p552_p0, %p540_p9  ;;  %p561_p4 = por %p560_p1, %p559_p6 }
  0x1f   : > { %p555_p3 = pneg %p554_p2 }
  0x21   : > { %p562_p5 = pnand %p561_p4, %p555_p3 }
  0x23   : > { %565 = shalt.err (!%p562_p5)
}
  0x24   : > { %s637_s15 = smov 128   ;;  %s638_s16 = smov 8  }
  0x25   : > { %488 = dma.hbm_to_vmem [thread:$0]  (!%p715_p7), %s822_s1, 512, %s174_s27, [#allocation6], %s637_s15, %s637_s15, %s638_s16  }
  0x26   : > { %p25_p8 = scmp.eq.s32.totalorder %s24_s6, 0  ;;  %p34_p9 = scmp.ne.s32.totalorder %s630_s22, %s626_s21 }
  0x27   : > { %p35_p1 = scmp.eq.s32.totalorder %s634_s23, 0  ;;  %p494_p4 = scmp.lt.s32.totalorder %s634_s23, 3 }
  0x28   : > { %s746_s19 = scalar_select %p25_p8, %s630_s22, %s27_s30  }
  0x29   : > { %p36_p5 = por %p35_p1, %p34_p9  ;;  %s196_s20 = sand.u32 1, %s630_s22  }
  0x2a   : > { %s445_s26 = sshll.u32 %s196_s20, 3  ;;  %s446_s7 = sshll.u32 %s634_s23, 7 }
  0x2b   : > { %s753_s10 = scalar_lea.hbm %s821_s0, %s446_s7  ;;  %s200_s27 = scalar_lea.vmem [#allocation3], %s445_s26 }
  0x2c   : > { %s207_s28 = sshll.u32 %s200_s27, 4  ;;  %p757_p7 = pnand %p494_p4, %p36_p5  ;;  %s755_s28 = int_to_ptr.vmem [resolvable:$true] %s207_s28 }
  0x2d   : > { %s197_s23 = scalar_lea.sflag [#allocation4], %s196_s20  ;;  %s566_s6 = scalar_lea.hbm %s753_s10, 128 }
  0x2e   : > { %p567_p10 = scmp.ne.s32.totalorder %s753_s10, %s566_s6  ;;  %p568_p11 = pneg %p757_p7 }
  0x2f   : > { %s571_s13 = scalar_lea.hbm %s821_s0, 384  ;;  %p572_p0 = scmp.lt.u32.totalorder %s753_s10, %s821_s0 }
  0x30   : > { %p569_p12 = pnand %p568_p11, %p567_p10  ;;  %p573_p2 = scmp.lt.u32.totalorder %s571_s13, %s566_s6 }
  0x31   : > { %p575_p6 = scmp.lt.u32.totalorder %s566_s6, %s753_s10 }
  0x32   : > { %p570_p13 = pneg %p569_p12  ;;  %p574_p3 = por %p573_p2, %p572_p0 }
  0x34   : > { %p576_p8 = por %p575_p6, %p574_p3 }
  0x36   : > { %p577_p9 = pnand %p576_p8, %p570_p13 }
  0x38   : > { %580 = shalt.err (!%p577_p9)
}
  0x39   : > { %s581_s16 = scalar_lea.vmem %s755_s28, 128  ;;  %s639_s17 = smov [#allocation3]  }
  0x3a   : > { %p582_p1 = scmp.ne.s32.totalorder %s755_s28, %s581_s16  ;;  %s586_s18 = sshll.u32 %s639_s17, 4  ;;  %s587_s18 = int_to_ptr.vmem [resolvable:$false] %s586_s18 }
  0x3b   : > { %s588_s20 = scalar_lea.vmem %s587_s18, 256  ;;  %p589_p10 = scmp.lt.s32.totalorder %s755_s28, %s587_s18 }
  0x3c   : > { %p584_p4 = pnand %p582_p1, %p568_p11  ;;  %p590_p12 = scmp.lt.s32.totalorder %s588_s20, %s581_s16 }
  0x3e   : > { %p585_p5 = pneg %p584_p4  ;;  %p591_p0 = por %p590_p12, %p589_p10 }
  0x40   : > { %p592_p2 = pnand %p591_p0, %p585_p5 }
  0x42   : > { %595 = shalt.err (!%p592_p2)
}
  0x43   : > { %492 = dma.hbm_to_vmem [thread:$0]  (!%p757_p7), %s753_s10, 128, %s755_s28, %s197_s23  }
  0x44   : > { %p834_p13 = scmp.ne.s32.totalorder %s831_s25, 0 }
  0x45   : > { %s218_s26 = sand.u32 (!%p834_p13), 1, %s626_s21   ;;  %p835_p11 = scmp.ne.s32.totalorder (!%p834_p13), %s830_s24, 0 }
  0x46   : > { %216 = sbr.rel (%p834_p13) target bundleno = 481 (0x1e1), region = 40  ;;  %s448_s7 = sshll.u32 (!%p834_p13), %s218_s26, 3 }
  0x47   : > { %s219_s8 = scalar_lea.sflag (!%p834_p13), [#allocation4], %s218_s26  ;;  %s222_s9 = scalar_lea.vmem (!%p834_p13), [#allocation3], %s448_s7 }
  0x4d   : > { %613 = dma.done.wait (%p835_p11), %s219_s8, 128  }
  0x4e   : > { %615 = vsyncadd (%p835_p11), %s219_s8, 4294967168  ;;  %p836_p3 = scmp.eq.s32.totalorder %s695_s4, 0 }
  0x50   : > { %617 = dma.done.wait (%p836_p3), [#allocation6], 512   ;;  %p837_p6 = pmov %p836_p3 }
  0x51   : > { %v640_v0 = vmov 0.0|0.0   ;;  %vm641_vm0 = vmmov 0   ;;  %v642_v1 = vmov 0.0   ;;  %v257_v2 = vld [vmem:[#allocation5] sm:$0xff]  ;;  %v258_v3 = vld [vmem:[#allocation5 + $0x8] sm:$0xff]  ;;  %v259_v4 = vld [vmem:[#allocation5 + $0x10] sm:$0xff] }
  0x52   : > { %619 = vsyncadd (%p837_p6), [#allocation6], 4294966784  ;;  %473 = vmatprep.subr.bf16.mxu0 %v640_v0  ;;  %470 = vmatprep.mubr.msk.f32.mxu0 %vm641_vm0, %v642_v1  ;;  %v474_v5 = vpack.c.bf16 %v258_v3, %v257_v2  ;;  %v260_v6 = vld [vmem:[#allocation5 + $0x18] sm:$0xff]  ;;  %vm268_vm1 = vcmask 261120   ;;  %v451_v9 = vld [vmem:[%s823_s2] ss:$0 sm:$0xff] }
  0x53   : > { %v477_v7 = vpack.c.bf16 %v260_v6, %v259_v4  ;;  %v256_v8 = vld [vmem:[%s222_s9] sm:$0xff]  ;;  %vm351_vm2 = vcmask 523264   ;;  %s355_s28 = sld [smem:[#allocation2]]  ;;  %p252_p7 = scmp.lt.s32.totalorder %s695_s4, 2  ;;  %vm364_vm3 = vcmask 7168  }
  0x54   : > { %475 = vmatpush3.bf16.msra.mxu0 %v474_v5  ;;  %v453_v13 = vld [vmem:[%s824_s3] ss:$0 sm:$0xff] }
  0x55   : > { %476 = vmatprep.subr.bf16.mxu0 %v640_v0  ;;  %s843_s4 = smov (!%p252_p7, %s695_s4), 2 }
  0x56   : > { %s450_s30 = sshll.u32 %s843_s4, 3 }
  0x57   : > { %s255_s11 = scalar_lea.vmem %s826_s5, %s450_s30 }
  0x58   : > { %478 = vmatpush3.bf16.msra.mxu0 %v477_v7 }
  0x59   : > { %v356_v17 = vstv %s355_s28 }
  0x5b   : > { %471 = vmatmul.mubr.msk.f32.vlgmr.msra.gmra.mrb[0].mxu0 %vm268_vm1, %v256_v8 }
 0x12e   : > { %v338_v10 = vpop.f32.mrb[0].mxu0 }
 0x12f   : > { %v339_v11 = vadd.f32 %v451_v9, %v338_v10  ;;  %v472_v12 = vpop.f32.mrb[1].mxu0 }
 0x131   : > { %v342_v14 = vmax.f32 %v339_v11, 0.0 }
 0x133   : > { %v350_v15 = vmul.f32 %v453_v13, %v342_v14 }
 0x135   : > { %v352_v16 = vsel %vm351_vm2, %v350_v15, 0.0 }
 0x136   : > { %353 = vadd.xlane.f32.xlu0 %v352_v16 }
 0x1c3   : > { %v354_v18 = vpop.xlane.xlu0 %353 }
 0x1c4   : > { %v357_v19 = vadd.f32 %v356_v17, %v354_v18 }
 0x1c6   : > { %v454_v20 = vmul.f32 -1.442695, %v357_v19 }
 0x1c8   : > { %534 = vpow2.f32 %v454_v20 }
 0x1d2   : > { %v535_v21 = vpop.eup %534 }
 0x1d3   : > { %v361_v22 = vadd.f32 1.0, %v535_v21 }
 0x1d5   : > { %536 = vrcp.f32 %v361_v22 }
 0x1df   : > { %v537_v23 = vpop.eup %536 }
 0x1e0   : > { %365 = vst.msk [vmem:[%s255_s11] sm:$0xff] %vm364_vm3, %v537_v23 }
 0x1e1 PF: > { %p17_p8 = scmp.ge.s32.totalorder %s720_s29, 5   ;;  %s838_s20 = smov %s626_s21 }
 0x1e2   : > { %s839_s21 = smov %s630_s22  ;;  %s840_s22 = smov %s746_s19 }
 0x1e3   : > { %s841_s23 = smov %s720_s29  ;;  %19 = sbr.rel (!%p17_p8) target bundleno = 6 (0x6), region = 84 }
 0x1ea   :  { %385 = vsyncpa [#allocation4], 1 }
 0x1eb   :  { %387 = vsyncpa [#allocation4 + $0x1], 1 }
 0x1ec   :  { %388 = vsyncpa [#allocation6], 1 }

</bundles_post_ra>
